<compile_context>
chip_gen: v7x
topology: tpu7x:2x2x1
jax: 0.10.0
libtpu: 0.0.40
codegen_flags: <defaults>
</compile_context>

<pallas_src>
import functools
import math

import jax
import jax.numpy as jnp
from jax.experimental import pallas as pl
from jax.experimental.pallas import tpu as pltpu


def _double_conv_kernel(H, W, pad,
                        x_ref, w1_ref, b1_ref, w2_ref, b2_ref, o_ref,
                        xbuf_ref, p1_ref, mbuf_ref, p2_ref):
    """Fused 3x3 conv -> ReLU -> 3x3 conv -> ReLU for one batch element.

    x_ref  : (1, Cin, H*W)     un-padded input image, flattened spatially (NCHW flat)
    w1_ref : (Cmid, 9*Cin)     conv1 weights, (dy, dx, cin) flattened on axis 1
    b1_ref : (Cmid, 1)
    w2_ref : (Cout, 9*Cmid)    conv2 weights
    b2_ref : (Cout, 1)
    o_ref  : (1, Cout, H*W)    lane-dense output (reshaped to NCHW in the wrapper)
    xbuf_ref : VMEM (Cin,  pad + H*W + pad)  zero-guarded flat input staging
    p1_ref   : VMEM (9*Cin,  H*W)            im2col patches for conv1
    mbuf_ref : VMEM (Cmid, pad + H*W + pad)  zero-guarded flat intermediate (VMEM only)
    p2_ref   : VMEM (9*Cmid, H*W)            im2col patches for conv2
    """
    HW = H * W
    Cin = x_ref.shape[1]
    Cmid = w1_ref.shape[0]

    # Column index of every flattened pixel; masks zero the left/right padding columns
    # (the top/bottom halo rows are genuine zeros in the guard regions of the buffers).
    col = jax.lax.broadcasted_iota(jnp.int32, (1, HW), 1) % W
    col_masks = {
        0: (col >= 1).astype(jnp.float32),       # dx = 0 : needs col-1 >= 0
        2: (col <= W - 2).astype(jnp.float32),   # dx = 2 : needs col+1 <  W
    }

    def im2col(src_ref, patches_ref, c):
        # src_ref holds the flat image at [pad : pad + HW] with >= W+1 zeros on each
        # side, so every 3x3 tap is a pure static lane shift of the flat image.
        for dy in range(3):
            for dx in range(3):
                tap = dy * 3 + dx
                start = pad + (dy - 1) * W + (dx - 1)
                window = src_ref[:, start:start + HW]            # (c, HW)
                if dx != 1:
                    window = window * col_masks[dx]              # zero L/R pad cols
                patches_ref[tap * c:(tap + 1) * c, :] = window

    # ---- conv1: stage input into the zero-guarded VMEM buffer (in-kernel padding) ----
    # Only the guard regions need zeroing; the interior is fully overwritten below.
    xbuf_ref[:, :pad] = jnp.zeros((Cin, pad), jnp.float32)
    xbuf_ref[:, pad + HW:] = jnp.zeros((Cin, pad), jnp.float32)
    xbuf_ref[:, pad:pad + HW] = x_ref[0]
    im2col(xbuf_ref, p1_ref, Cin)
    mid = jnp.dot(w1_ref[...], p1_ref[...], preferred_element_type=jnp.float32)
    mid = jnp.maximum(mid + b1_ref[...], 0.0)                    # (Cmid, HW), fused ReLU

    # ---- conv2: intermediate activation never leaves VMEM ----
    mbuf_ref[:, :pad] = jnp.zeros((Cmid, pad), jnp.float32)
    mbuf_ref[:, pad + HW:] = jnp.zeros((Cmid, pad), jnp.float32)
    mbuf_ref[:, pad:pad + HW] = mid
    im2col(mbuf_ref, p2_ref, Cmid)
    out = jnp.dot(w2_ref[...], p2_ref[...], preferred_element_type=jnp.float32)
    out = jnp.maximum(out + b2_ref[...], 0.0)                    # (Cout, HW), fused ReLU

    o_ref[0] = out.astype(o_ref.dtype)


@jax.jit
def double_conv(x_nchw, w1, b1, w2, b2):
    """DoubleConv forward. x_nchw: (N, Cin, H, W); weights in PyTorch OIHW layout."""
    N, Cin, H, W = x_nchw.shape
    Cmid = w1.shape[0]
    Cout = w2.shape[0]
    HW = H * W
    # Guard zeros on each side of the flat image; >= W+1 and 128-aligned so the
    # interior write xbuf[:, pad:pad+HW] is lane-aligned.
    pad = ((W + 1 + 127) // 128) * 128
    L = pad + HW + pad

    x2 = x_nchw.reshape(N, Cin, HW)                              # free reshape (NCHW flat)
    # OIHW -> (Cout, dy, dx, Cin) -> (Cout, 9*Cin): matches im2col row order tap*C + cin.
    w1f = jnp.transpose(w1, (0, 2, 3, 1)).reshape(Cmid, 9 * Cin)
    w2f = jnp.transpose(w2, (0, 2, 3, 1)).reshape(Cout, 9 * Cmid)
    b1c = b1.reshape(Cmid, 1)
    b2c = b2.reshape(Cout, 1)

    kernel = functools.partial(_double_conv_kernel, H, W, pad)
    y = pl.pallas_call(
        kernel,
        out_shape=jax.ShapeDtypeStruct((N, Cout, HW), jnp.float32),
        grid=(N,),
        in_specs=[
            pl.BlockSpec((1, Cin, HW), lambda n: (n, 0, 0)),
            pl.BlockSpec((Cmid, 9 * Cin), lambda n: (0, 0)),
            pl.BlockSpec((Cmid, 1), lambda n: (0, 0)),
            pl.BlockSpec((Cout, 9 * Cmid), lambda n: (0, 0)),
            pl.BlockSpec((Cout, 1), lambda n: (0, 0)),
        ],
        out_specs=pl.BlockSpec((1, Cout, HW), lambda n: (n, 0, 0)),
        scratch_shapes=[
            pltpu.VMEM((Cin, L), jnp.float32),
            pltpu.VMEM((9 * Cin, HW), jnp.float32),
            pltpu.VMEM((Cmid, L), jnp.float32),
            pltpu.VMEM((9 * Cmid, HW), jnp.float32),
        ],
        compiler_params=pltpu.CompilerParams(dimension_semantics=("parallel",)),
    )(x2, w1f, b1c, w2f, b2c)
    return y.reshape(N, Cout, H, W)                              # free reshape -> NCHW


def ref_double_conv(x, w1, b1, w2, b2):
    """Pure-JAX reference (lax conv, HIGHEST precision), NCHW / OIHW."""
    def conv(xx, ww, bb):
        y = jax.lax.conv_general_dilated(
            xx, ww, window_strides=(1, 1), padding=((1, 1), (1, 1)),
            dimension_numbers=("NCHW", "OIHW", "NCHW"),
            precision=jax.lax.Precision.HIGHEST,
        )
        return jnp.maximum(y + bb.reshape(1, -1, 1, 1), 0.0)
    return conv(conv(x, w1, b1), w2, b2)


if __name__ == "__main__":
    key = jax.random.PRNGKey(0)
    k_x, k_w1, k_b1, k_w2, k_b2 = jax.random.split(key, 5)

    N, Cin, H, W = 2, 4, 16, 16
    Cout = 8

    x = jax.random.normal(k_x, (N, Cin, H, W), jnp.float32)

    # PyTorch Conv2d default init: U(-1/sqrt(fan_in), 1/sqrt(fan_in)), fan_in = Cin*3*3
    bound1 = 1.0 / math.sqrt(Cin * 9)
    w1 = jax.random.uniform(k_w1, (Cout, Cin, 3, 3), jnp.float32, -bound1, bound1)
    b1 = jax.random.uniform(k_b1, (Cout,), jnp.float32, -bound1, bound1)

    bound2 = 1.0 / math.sqrt(Cout * 9)
    w2 = jax.random.uniform(k_w2, (Cout, Cout, 3, 3), jnp.float32, -bound2, bound2)
    b2 = jax.random.uniform(k_b2, (Cout,), jnp.float32, -bound2, bound2)

    y = double_conv(x, w1, b1, w2, b2)
    y = jax.block_until_ready(y)

    y_ref = ref_double_conv(x, w1, b1, w2, b2)
    assert y.shape == (N, Cout, H, W), y.shape
    # Kernel uses DEFAULT matmul precision (bf16 MXU passes, f32 accumulation), so
    # compare against the f32 HIGHEST reference with a bf16-class tolerance.
    max_err = float(jnp.max(jnp.abs(y - y_ref)))
    assert jnp.allclose(y, y_ref, rtol=2e-2, atol=2e-2), max_err

    print("KERNEL_OK")
</pallas_src>

<mosaic_0001>
module attributes {stable_mosaic.version = 11 : i64} {
  func.func @_double_conv_kernel(%arg0: i32, %arg1: memref<1x4x256xf32, #tpu.memory_space<vmem>>, %arg2: memref<8x36xf32, #tpu.memory_space<vmem>>, %arg3: memref<8x1xf32, #tpu.memory_space<vmem>>, %arg4: memref<8x72xf32, #tpu.memory_space<vmem>>, %arg5: memref<8x1xf32, #tpu.memory_space<vmem>>, %arg6: memref<1x8x256xf32, #tpu.memory_space<vmem>>, %arg7: memref<4x512xf32, #tpu.memory_space<vmem>>, %arg8: memref<36x256xf32, #tpu.memory_space<vmem>>, %arg9: memref<8x512xf32, #tpu.memory_space<vmem>>, %arg10: memref<72x256xf32, #tpu.memory_space<vmem>>) attributes {dimension_semantics = [#tpu.dimension_semantics<parallel>], iteration_bounds = array<i64: 2>, scalar_prefetch = 0 : i64, scratch_operands = 4 : i64, tpu.core_type = #tpu.core_type<tc>, window_params = [{transform_indices = @transform_0, window_bounds = array<i64: 1, 4, 256>}, {pipeline_mode = #tpu.pipeline_mode<synchronous>, transform_indices = @transform_1, window_bounds = array<i64: 8, 36>}, {pipeline_mode = #tpu.pipeline_mode<synchronous>, transform_indices = @transform_2, window_bounds = array<i64: 8, 1>}, {pipeline_mode = #tpu.pipeline_mode<synchronous>, transform_indices = @transform_3, window_bounds = array<i64: 8, 72>}, {pipeline_mode = #tpu.pipeline_mode<synchronous>, transform_indices = @transform_4, window_bounds = array<i64: 8, 1>}, {transform_indices = @transform_5, window_bounds = array<i64: 1, 8, 256>}]} {
    %0 = tpu.iota {dimensions = array<i32: 1>} : vector<1x256xi32>
    %c16_i32 = arith.constant 16 : i32
    %c0_i32 = arith.constant 0 : i32
    %1 = arith.cmpi eq, %c16_i32, %c0_i32 : i32
    %c1_i32 = arith.constant 1 : i32
    %2 = arith.select %1, %c1_i32, %c16_i32 : i32
    %3 = vector.broadcast %2 : i32 to vector<1x256xi32>
    %4 = arith.remsi %0, %3 : vector<1x256xi32>
    %c0_i32_0 = arith.constant 0 : i32
    %5 = vector.broadcast %c0_i32_0 : i32 to vector<1x256xi32>
    %6 = arith.cmpi ne, %4, %5 : vector<1x256xi32>
    %c0_i32_1 = arith.constant 0 : i32
    %7 = vector.broadcast %c0_i32_1 : i32 to vector<1x256xi32>
    %8 = arith.cmpi slt, %4, %7 : vector<1x256xi32>
    %c0_i32_2 = arith.constant 0 : i32
    %9 = arith.cmpi slt, %2, %c0_i32_2 : i32
    %10 = vector.broadcast %9 : i1 to vector<1x256xi1>
    %11 = vector.broadcast %10 : vector<1x256xi1> to vector<1x256xi1>
    %12 = arith.xori %8, %11 : vector<1x256xi1>
    %13 = arith.andi %12, %6 : vector<1x256xi1>
    %14 = vector.broadcast %2 : i32 to vector<1x256xi32>
    %15 = arith.addi %4, %14 : vector<1x256xi32>
    %16 = arith.select %13, %15, %4 : vector<1x256xi1>, vector<1x256xi32>
    %c1_i32_3 = arith.constant 1 : i32
    %17 = vector.broadcast %c1_i32_3 : i32 to vector<1x256xi32>
    %18 = arith.cmpi sge, %16, %17 : vector<1x256xi32>
    %19 = arith.extui %18 : vector<1x256xi1> to vector<1x256xi32>
    %20 = arith.sitofp %19 : vector<1x256xi32> to vector<1x256xf32>
    %c14_i32 = arith.constant 14 : i32
    %21 = vector.broadcast %c14_i32 : i32 to vector<1x256xi32>
    %22 = arith.cmpi sle, %16, %21 : vector<1x256xi32>
    %23 = arith.extui %22 : vector<1x256xi1> to vector<1x256xi32>
    %24 = arith.sitofp %23 : vector<1x256xi32> to vector<1x256xf32>
    %cst = arith.constant 0.000000e+00 : f32
    %25 = vector.broadcast %cst : f32 to vector<4x128xf32>
    %c0 = arith.constant 0 : index
    %c0_4 = arith.constant 0 : index
    %26 = vector.load %arg7[%c0, %c0_4] : memref<4x512xf32, #tpu.memory_space<vmem>>, vector<4x128xf32>
    tpu.vector_store %arg7[%c0, %c0_4], %25 {strides = array<i32>} : memref<4x512xf32, #tpu.memory_space<vmem>>, vector<4x128xf32>,
    %cst_5 = arith.constant 0.000000e+00 : f32
    %27 = vector.broadcast %cst_5 : f32 to vector<4x128xf32>
    %c0_6 = arith.constant 0 : index
    %c384 = arith.constant 384 : index
    %28 = vector.load %arg7[%c0_6, %c384] : memref<4x512xf32, #tpu.memory_space<vmem>>, vector<4x128xf32>
    tpu.vector_store %arg7[%c0_6, %c384], %27 {strides = array<i32>} : memref<4x512xf32, #tpu.memory_space<vmem>>, vector<4x128xf32>,
    %c0_7 = arith.constant 0 : index
    %c0_8 = arith.constant 0 : index
    %c0_9 = arith.constant 0 : index
    %29 = vector.load %arg1[%c0_7, %c0_8, %c0_9] : memref<1x4x256xf32, #tpu.memory_space<vmem>>, vector<1x4x256xf32>
    %30 = vector.shape_cast %29 : vector<1x4x256xf32> to vector<4x256xf32>
    %c0_10 = arith.constant 0 : index
    %c128 = arith.constant 128 : index
    %31 = vector.load %arg7[%c0_10, %c128] : memref<4x512xf32, #tpu.memory_space<vmem>>, vector<4x256xf32>
    tpu.vector_store %arg7[%c0_10, %c128], %30 {strides = array<i32>} : memref<4x512xf32, #tpu.memory_space<vmem>>, vector<4x256xf32>,
    %c0_11 = arith.constant 0 : index
    %c111 = arith.constant 111 : index
    %32 = vector.load %arg7[%c0_11, %c111] : memref<4x512xf32, #tpu.memory_space<vmem>>, vector<4x256xf32>
    %33 = vector.broadcast %20 : vector<1x256xf32> to vector<4x256xf32>
    %34 = arith.mulf %32, %33 : vector<4x256xf32>
    %c0_12 = arith.constant 0 : index
    %c0_13 = arith.constant 0 : index
    %35 = vector.load %arg8[%c0_12, %c0_13] : memref<36x256xf32, #tpu.memory_space<vmem>>, vector<4x256xf32>
    tpu.vector_store %arg8[%c0_12, %c0_13], %34 {strides = array<i32>} : memref<36x256xf32, #tpu.memory_space<vmem>>, vector<4x256xf32>,
    %c0_14 = arith.constant 0 : index
    %c112 = arith.constant 112 : index
    %36 = vector.load %arg7[%c0_14, %c112] : memref<4x512xf32, #tpu.memory_space<vmem>>, vector<4x256xf32>
    %c4 = arith.constant 4 : index
    %c0_15 = arith.constant 0 : index
    %37 = vector.load %arg8[%c4, %c0_15] : memref<36x256xf32, #tpu.memory_space<vmem>>, vector<4x256xf32>
    tpu.vector_store %arg8[%c4, %c0_15], %36 {strides = array<i32>} : memref<36x256xf32, #tpu.memory_space<vmem>>, vector<4x256xf32>,
    %c0_16 = arith.constant 0 : index
    %c113 = arith.constant 113 : index
    %38 = vector.load %arg7[%c0_16, %c113] : memref<4x512xf32, #tpu.memory_space<vmem>>, vector<4x256xf32>
    %39 = vector.broadcast %24 : vector<1x256xf32> to vector<4x256xf32>
    %40 = arith.mulf %38, %39 : vector<4x256xf32>
    %c8 = arith.constant 8 : index
    %c0_17 = arith.constant 0 : index
    %41 = vector.load %arg8[%c8, %c0_17] : memref<36x256xf32, #tpu.memory_space<vmem>>, vector<4x256xf32>
    tpu.vector_store %arg8[%c8, %c0_17], %40 {strides = array<i32>} : memref<36x256xf32, #tpu.memory_space<vmem>>, vector<4x256xf32>,
    %c0_18 = arith.constant 0 : index
    %c127 = arith.constant 127 : index
    %42 = vector.load %arg7[%c0_18, %c127] : memref<4x512xf32, #tpu.memory_space<vmem>>, vector<4x256xf32>
    %43 = vector.broadcast %20 : vector<1x256xf32> to vector<4x256xf32>
    %44 = arith.mulf %42, %43 : vector<4x256xf32>
    %c12 = arith.constant 12 : index
    %c0_19 = arith.constant 0 : index
    %45 = vector.load %arg8[%c12, %c0_19] : memref<36x256xf32, #tpu.memory_space<vmem>>, vector<4x256xf32>
    tpu.vector_store %arg8[%c12, %c0_19], %44 {strides = array<i32>} : memref<36x256xf32, #tpu.memory_space<vmem>>, vector<4x256xf32>,
    %c0_20 = arith.constant 0 : index
    %c128_21 = arith.constant 128 : index
    %46 = vector.load %arg7[%c0_20, %c128_21] : memref<4x512xf32, #tpu.memory_space<vmem>>, vector<4x256xf32>
    %c16 = arith.constant 16 : index
    %c0_22 = arith.constant 0 : index
    %47 = vector.load %arg8[%c16, %c0_22] : memref<36x256xf32, #tpu.memory_space<vmem>>, vector<4x256xf32>
    tpu.vector_store %arg8[%c16, %c0_22], %46 {strides = array<i32>} : memref<36x256xf32, #tpu.memory_space<vmem>>, vector<4x256xf32>,
    %c0_23 = arith.constant 0 : index
    %c129 = arith.constant 129 : index
    %48 = vector.load %arg7[%c0_23, %c129] : memref<4x512xf32, #tpu.memory_space<vmem>>, vector<4x256xf32>
    %49 = vector.broadcast %24 : vector<1x256xf32> to vector<4x256xf32>
    %50 = arith.mulf %48, %49 : vector<4x256xf32>
    %c20 = arith.constant 20 : index
    %c0_24 = arith.constant 0 : index
    %51 = vector.load %arg8[%c20, %c0_24] : memref<36x256xf32, #tpu.memory_space<vmem>>, vector<4x256xf32>
    tpu.vector_store %arg8[%c20, %c0_24], %50 {strides = array<i32>} : memref<36x256xf32, #tpu.memory_space<vmem>>, vector<4x256xf32>,
    %c0_25 = arith.constant 0 : index
    %c143 = arith.constant 143 : index
    %52 = vector.load %arg7[%c0_25, %c143] : memref<4x512xf32, #tpu.memory_space<vmem>>, vector<4x256xf32>
    %53 = vector.broadcast %20 : vector<1x256xf32> to vector<4x256xf32>
    %54 = arith.mulf %52, %53 : vector<4x256xf32>
    %c24 = arith.constant 24 : index
    %c0_26 = arith.constant 0 : index
    %55 = vector.load %arg8[%c24, %c0_26] : memref<36x256xf32, #tpu.memory_space<vmem>>, vector<4x256xf32>
    tpu.vector_store %arg8[%c24, %c0_26], %54 {strides = array<i32>} : memref<36x256xf32, #tpu.memory_space<vmem>>, vector<4x256xf32>,
    %c0_27 = arith.constant 0 : index
    %c144 = arith.constant 144 : index
    %56 = vector.load %arg7[%c0_27, %c144] : memref<4x512xf32, #tpu.memory_space<vmem>>, vector<4x256xf32>
    %c28 = arith.constant 28 : index
    %c0_28 = arith.constant 0 : index
    %57 = vector.load %arg8[%c28, %c0_28] : memref<36x256xf32, #tpu.memory_space<vmem>>, vector<4x256xf32>
    tpu.vector_store %arg8[%c28, %c0_28], %56 {strides = array<i32>} : memref<36x256xf32, #tpu.memory_space<vmem>>, vector<4x256xf32>,
    %c0_29 = arith.constant 0 : index
    %c145 = arith.constant 145 : index
    %58 = vector.load %arg7[%c0_29, %c145] : memref<4x512xf32, #tpu.memory_space<vmem>>, vector<4x256xf32>
    %59 = vector.broadcast %24 : vector<1x256xf32> to vector<4x256xf32>
    %60 = arith.mulf %58, %59 : vector<4x256xf32>
    %c32 = arith.constant 32 : index
    %c0_30 = arith.constant 0 : index
    %61 = vector.load %arg8[%c32, %c0_30] : memref<36x256xf32, #tpu.memory_space<vmem>>, vector<4x256xf32>
    tpu.vector_store %arg8[%c32, %c0_30], %60 {strides = array<i32>} : memref<36x256xf32, #tpu.memory_space<vmem>>, vector<4x256xf32>,
    %c0_31 = arith.constant 0 : index
    %c0_32 = arith.constant 0 : index
    %62 = vector.load %arg2[%c0_31, %c0_32] : memref<8x36xf32, #tpu.memory_space<vmem>>, vector<8x36xf32>
    %c0_33 = arith.constant 0 : index
    %c0_34 = arith.constant 0 : index
    %63 = vector.load %arg8[%c0_33, %c0_34] : memref<36x256xf32, #tpu.memory_space<vmem>>, vector<36x256xf32>
    %cst_35 = arith.constant dense<0.000000e+00> : vector<8x256xf32>
    %64 = tpu.matmul %62, %63, %cst_35 {dimension_numbers = #tpu.dot_dimension_numbers<[1], [0], [0], [1], [0, 0, 1, 1], [], []>} : vector<8x36xf32>, vector<36x256xf32>, vector<8x256xf32> -> vector<8x256xf32>
    %c0_36 = arith.constant 0 : index
    %c0_37 = arith.constant 0 : index
    %65 = vector.load %arg3[%c0_36, %c0_37] : memref<8x1xf32, #tpu.memory_space<vmem>>, vector<8x1xf32>
    %66 = vector.broadcast %65 : vector<8x1xf32> to vector<8x256xf32>
    %67 = arith.addf %64, %66 : vector<8x256xf32>
    %cst_38 = arith.constant 0.000000e+00 : f32
    %68 = vector.broadcast %cst_38 : f32 to vector<8x256xf32>
    %69 = arith.maximumf %67, %68 : vector<8x256xf32>
    %cst_39 = arith.constant 0.000000e+00 : f32
    %70 = vector.broadcast %cst_39 : f32 to vector<8x128xf32>
    %c0_40 = arith.constant 0 : index
    %c0_41 = arith.constant 0 : index
    %71 = vector.load %arg9[%c0_40, %c0_41] : memref<8x512xf32, #tpu.memory_space<vmem>>, vector<8x128xf32>
    tpu.vector_store %arg9[%c0_40, %c0_41], %70 {strides = array<i32>} : memref<8x512xf32, #tpu.memory_space<vmem>>, vector<8x128xf32>,
    %cst_42 = arith.constant 0.000000e+00 : f32
    %72 = vector.broadcast %cst_42 : f32 to vector<8x128xf32>
    %c0_43 = arith.constant 0 : index
    %c384_44 = arith.constant 384 : index
    %73 = vector.load %arg9[%c0_43, %c384_44] : memref<8x512xf32, #tpu.memory_space<vmem>>, vector<8x128xf32>
    tpu.vector_store %arg9[%c0_43, %c384_44], %72 {strides = array<i32>} : memref<8x512xf32, #tpu.memory_space<vmem>>, vector<8x128xf32>,
    %c0_45 = arith.constant 0 : index
    %c128_46 = arith.constant 128 : index
    %74 = vector.load %arg9[%c0_45, %c128_46] : memref<8x512xf32, #tpu.memory_space<vmem>>, vector<8x256xf32>
    tpu.vector_store %arg9[%c0_45, %c128_46], %69 {strides = array<i32>} : memref<8x512xf32, #tpu.memory_space<vmem>>, vector<8x256xf32>,
    %c0_47 = arith.constant 0 : index
    %c111_48 = arith.constant 111 : index
    %75 = vector.load %arg9[%c0_47, %c111_48] : memref<8x512xf32, #tpu.memory_space<vmem>>, vector<8x256xf32>
    %76 = vector.broadcast %20 : vector<1x256xf32> to vector<8x256xf32>
    %77 = arith.mulf %75, %76 : vector<8x256xf32>
    %c0_49 = arith.constant 0 : index
    %c0_50 = arith.constant 0 : index
    %78 = vector.load %arg10[%c0_49, %c0_50] : memref<72x256xf32, #tpu.memory_space<vmem>>, vector<8x256xf32>
    tpu.vector_store %arg10[%c0_49, %c0_50], %77 {strides = array<i32>} : memref<72x256xf32, #tpu.memory_space<vmem>>, vector<8x256xf32>,
    %c0_51 = arith.constant 0 : index
    %c112_52 = arith.constant 112 : index
    %79 = vector.load %arg9[%c0_51, %c112_52] : memref<8x512xf32, #tpu.memory_space<vmem>>, vector<8x256xf32>
    %c8_53 = arith.constant 8 : index
    %c0_54 = arith.constant 0 : index
    %80 = vector.load %arg10[%c8_53, %c0_54] : memref<72x256xf32, #tpu.memory_space<vmem>>, vector<8x256xf32>
    tpu.vector_store %arg10[%c8_53, %c0_54], %79 {strides = array<i32>} : memref<72x256xf32, #tpu.memory_space<vmem>>, vector<8x256xf32>,
    %c0_55 = arith.constant 0 : index
    %c113_56 = arith.constant 113 : index
    %81 = vector.load %arg9[%c0_55, %c113_56] : memref<8x512xf32, #tpu.memory_space<vmem>>, vector<8x256xf32>
    %82 = vector.broadcast %24 : vector<1x256xf32> to vector<8x256xf32>
    %83 = arith.mulf %81, %82 : vector<8x256xf32>
    %c16_57 = arith.constant 16 : index
    %c0_58 = arith.constant 0 : index
    %84 = vector.load %arg10[%c16_57, %c0_58] : memref<72x256xf32, #tpu.memory_space<vmem>>, vector<8x256xf32>
    tpu.vector_store %arg10[%c16_57, %c0_58], %83 {strides = array<i32>} : memref<72x256xf32, #tpu.memory_space<vmem>>, vector<8x256xf32>,
    %c0_59 = arith.constant 0 : index
    %c127_60 = arith.constant 127 : index
    %85 = vector.load %arg9[%c0_59, %c127_60] : memref<8x512xf32, #tpu.memory_space<vmem>>, vector<8x256xf32>
    %86 = vector.broadcast %20 : vector<1x256xf32> to vector<8x256xf32>
    %87 = arith.mulf %85, %86 : vector<8x256xf32>
    %c24_61 = arith.constant 24 : index
    %c0_62 = arith.constant 0 : index
    %88 = vector.load %arg10[%c24_61, %c0_62] : memref<72x256xf32, #tpu.memory_space<vmem>>, vector<8x256xf32>
    tpu.vector_store %arg10[%c24_61, %c0_62], %87 {strides = array<i32>} : memref<72x256xf32, #tpu.memory_space<vmem>>, vector<8x256xf32>,
    %c0_63 = arith.constant 0 : index
    %c128_64 = arith.constant 128 : index
    %89 = vector.load %arg9[%c0_63, %c128_64] : memref<8x512xf32, #tpu.memory_space<vmem>>, vector<8x256xf32>
    %c32_65 = arith.constant 32 : index
    %c0_66 = arith.constant 0 : index
    %90 = vector.load %arg10[%c32_65, %c0_66] : memref<72x256xf32, #tpu.memory_space<vmem>>, vector<8x256xf32>
    tpu.vector_store %arg10[%c32_65, %c0_66], %89 {strides = array<i32>} : memref<72x256xf32, #tpu.memory_space<vmem>>, vector<8x256xf32>,
    %c0_67 = arith.constant 0 : index
    %c129_68 = arith.constant 129 : index
    %91 = vector.load %arg9[%c0_67, %c129_68] : memref<8x512xf32, #tpu.memory_space<vmem>>, vector<8x256xf32>
    %92 = vector.broadcast %24 : vector<1x256xf32> to vector<8x256xf32>
    %93 = arith.mulf %91, %92 : vector<8x256xf32>
    %c40 = arith.constant 40 : index
    %c0_69 = arith.constant 0 : index
    %94 = vector.load %arg10[%c40, %c0_69] : memref<72x256xf32, #tpu.memory_space<vmem>>, vector<8x256xf32>
    tpu.vector_store %arg10[%c40, %c0_69], %93 {strides = array<i32>} : memref<72x256xf32, #tpu.memory_space<vmem>>, vector<8x256xf32>,
    %c0_70 = arith.constant 0 : index
    %c143_71 = arith.constant 143 : index
    %95 = vector.load %arg9[%c0_70, %c143_71] : memref<8x512xf32, #tpu.memory_space<vmem>>, vector<8x256xf32>
    %96 = vector.broadcast %20 : vector<1x256xf32> to vector<8x256xf32>
    %97 = arith.mulf %95, %96 : vector<8x256xf32>
    %c48 = arith.constant 48 : index
    %c0_72 = arith.constant 0 : index
    %98 = vector.load %arg10[%c48, %c0_72] : memref<72x256xf32, #tpu.memory_space<vmem>>, vector<8x256xf32>
    tpu.vector_store %arg10[%c48, %c0_72], %97 {strides = array<i32>} : memref<72x256xf32, #tpu.memory_space<vmem>>, vector<8x256xf32>,
    %c0_73 = arith.constant 0 : index
    %c144_74 = arith.constant 144 : index
    %99 = vector.load %arg9[%c0_73, %c144_74] : memref<8x512xf32, #tpu.memory_space<vmem>>, vector<8x256xf32>
    %c56 = arith.constant 56 : index
    %c0_75 = arith.constant 0 : index
    %100 = vector.load %arg10[%c56, %c0_75] : memref<72x256xf32, #tpu.memory_space<vmem>>, vector<8x256xf32>
    tpu.vector_store %arg10[%c56, %c0_75], %99 {strides = array<i32>} : memref<72x256xf32, #tpu.memory_space<vmem>>, vector<8x256xf32>,
    %c0_76 = arith.constant 0 : index
    %c145_77 = arith.constant 145 : index
    %101 = vector.load %arg9[%c0_76, %c145_77] : memref<8x512xf32, #tpu.memory_space<vmem>>, vector<8x256xf32>
    %102 = vector.broadcast %24 : vector<1x256xf32> to vector<8x256xf32>
    %103 = arith.mulf %101, %102 : vector<8x256xf32>
    %c64 = arith.constant 64 : index
    %c0_78 = arith.constant 0 : index
    %104 = vector.load %arg10[%c64, %c0_78] : memref<72x256xf32, #tpu.memory_space<vmem>>, vector<8x256xf32>
    tpu.vector_store %arg10[%c64, %c0_78], %103 {strides = array<i32>} : memref<72x256xf32, #tpu.memory_space<vmem>>, vector<8x256xf32>,
    %c0_79 = arith.constant 0 : index
    %c0_80 = arith.constant 0 : index
    %105 = vector.load %arg4[%c0_79, %c0_80] : memref<8x72xf32, #tpu.memory_space<vmem>>, vector<8x72xf32>
    %c0_81 = arith.constant 0 : index
    %c0_82 = arith.constant 0 : index
    %106 = vector.load %arg10[%c0_81, %c0_82] : memref<72x256xf32, #tpu.memory_space<vmem>>, vector<72x256xf32>
    %cst_83 = arith.constant dense<0.000000e+00> : vector<8x256xf32>
    %107 = tpu.matmul %105, %106, %cst_83 {dimension_numbers = #tpu.dot_dimension_numbers<[1], [0], [0], [1], [0, 0, 1, 1], [], []>} : vector<8x72xf32>, vector<72x256xf32>, vector<8x256xf32> -> vector<8x256xf32>
    %c0_84 = arith.constant 0 : index
    %c0_85 = arith.constant 0 : index
    %108 = vector.load %arg5[%c0_84, %c0_85] : memref<8x1xf32, #tpu.memory_space<vmem>>, vector<8x1xf32>
    %109 = vector.broadcast %108 : vector<8x1xf32> to vector<8x256xf32>
    %110 = arith.addf %107, %109 : vector<8x256xf32>
    %cst_86 = arith.constant 0.000000e+00 : f32
    %111 = vector.broadcast %cst_86 : f32 to vector<8x256xf32>
    %112 = arith.maximumf %110, %111 : vector<8x256xf32>
    %c0_87 = arith.constant 0 : index
    %c0_88 = arith.constant 0 : index
    %c0_89 = arith.constant 0 : index
    %113 = vector.load %arg6[%c0_87, %c0_88, %c0_89] : memref<1x8x256xf32, #tpu.memory_space<vmem>>, vector<1x8x256xf32>
    %114 = vector.shape_cast %113 : vector<1x8x256xf32> to vector<8x256xf32>
    %115 = vector.shape_cast %112 : vector<8x256xf32> to vector<1x8x256xf32>
    tpu.vector_store %arg6[%c0_87, %c0_88, %c0_89], %115 {strides = array<i32>} : memref<1x8x256xf32, #tpu.memory_space<vmem>>, vector<1x8x256xf32>,
    return
  }
  func.func @transform_0(%arg0: i32) -> (i32, i32, i32) {
    %c0_i32 = arith.constant 0 : i32
    %c0_i32_0 = arith.constant 0 : i32
    %c0_i32_1 = arith.constant 0 : i32
    return %arg0, %c0_i32, %c0_i32_0 : i32, i32, i32
  }
  func.func @transform_1(%arg0: i32) -> (i32, i32) {
    %c0_i32 = arith.constant 0 : i32
    %c0_i32_0 = arith.constant 0 : i32
    %c0_i32_1 = arith.constant 0 : i32
    return %c0_i32, %c0_i32_0 : i32, i32
  }
  func.func @transform_2(%arg0: i32) -> (i32, i32) {
    %c0_i32 = arith.constant 0 : i32
    %c0_i32_0 = arith.constant 0 : i32
    %c0_i32_1 = arith.constant 0 : i32
    return %c0_i32, %c0_i32_0 : i32, i32
  }
  func.func @transform_3(%arg0: i32) -> (i32, i32) {
    %c0_i32 = arith.constant 0 : i32
    %c0_i32_0 = arith.constant 0 : i32
    %c0_i32_1 = arith.constant 0 : i32
    return %c0_i32, %c0_i32_0 : i32, i32
  }
  func.func @transform_4(%arg0: i32) -> (i32, i32) {
    %c0_i32 = arith.constant 0 : i32
    %c0_i32_0 = arith.constant 0 : i32
    %c0_i32_1 = arith.constant 0 : i32
    return %c0_i32, %c0_i32_0 : i32, i32
  }
  func.func @transform_5(%arg0: i32) -> (i32, i32, i32) {
    %c0_i32 = arith.constant 0 : i32
    %c0_i32_0 = arith.constant 0 : i32
    %c0_i32_1 = arith.constant 0 : i32
    return %arg0, %c0_i32, %c0_i32_0 : i32, i32, i32
  }
}

</mosaic_0001>

<bundles_post_ra>
// kernel: double_conv.1
= control target key start
LH: loop header
LB: loop body
LE: loop exit
PB: predicated region body
PF: predicated region fallthrough
CT: control target
= control target key end

     0   :  { %s1137_s18 = smov 0   ;;  %s1331_s0 = inlined_call_operand.vmem [shape: f32[2,4,256], index: 0, kind: input, shape index: {}]   ;;  %s1332_s1 = inlined_call_operand.vmem [shape: f32[8,36], index: 1, kind: input, shape index: {}]   ;;  %s1333_s2 = inlined_call_operand.vmem [shape: f32[8,1], index: 2, kind: input, shape index: {}]   ;;  %s1334_s3 = inlined_call_operand.vmem [shape: f32[8,72], index: 3, kind: input, shape index: {}]   ;;  %s1335_s4 = inlined_call_operand.vmem [shape: f32[8,1], index: 4, kind: input, shape index: {}]   ;;  %s1336_s5 = inlined_call_operand.vmem [shape: f32[2,8,256], index: 5, kind: output, shape index: {}]  }
   0x1 LB: > { %s954_s19 = sadd.s32 4294967295, %s1095_s18   ;;  %p958_p0 = scmp.ge.s32.totalorder %s1095_s18, 1  ;;  %s1095_s18 = sphi %s1137_s18, %s15_s18  }
   0x2   : > { %p187_p1 = scmp.lt.s32.totalorder %s1095_s18, 3 }
   0x4   : > { %p188_p2 = pnand %p958_p0, %p187_p1 }
   0x5   : > { %v225_v0 = vlaneseq (!%p188_p2)  ;;  %v1097_v1 = vmov (!%p188_p2), 0.0   ;;  %p215_p3 = scmp.lt.s32.totalorder (!%p188_p2), %s954_s19, 1  ;;  %s1098_s24 = smov (!%p188_p2), 127   ;;  %vm352_vm4 = vcmask (!%p188_p2), 1039360   ;;  %vm276_vm5 = vcmask (!%p188_p2), 908288  }
   0x6   : > { %191 = sbr.rel (%p188_p2) target bundleno = 881 (0x371), region = 40  ;;  %264 = vst [vmem:[#allocation2] sm:$0xf] (!%p188_p2), %v1097_v1  ;;  %265 = vst [vmem:[#allocation2 + $0xc] sm:$0xf] (!%p188_p2), %v1097_v1  ;;  %568 = vmatprep.mubr.f32.mxu0 (!%p188_p2), %v1097_v1  ;;  %888 = vmatprep.mubr.f32.mxu1 (!%p188_p2), %v1097_v1  ;;  %s1099_s25 = smov (!%p188_p2), 111  }
   0x7   : > { %v226_v2 = vand.u32 (!%p188_p2), 127, %v225_v0  ;;  %s1100_s26 = smov (!%p188_p2), 113   ;;  %s1101_s27 = smov (!%p188_p2), 15   ;;  %vm325_vm6 = vcmask (!%p188_p2), 924672   ;;  %vm368_vm7 = vcmask (!%p188_p2), 7168   ;;  %vm310_vm8 = vcmask (!%p188_p2), 130048  }
   0x8   : > { %s1102_s28 = smov (!%p188_p2), 1   ;;  %s1103_s29 = smov (!%p188_p2), 17   ;;  %vm340_vm9 = vcmask (!%p188_p2), 121856   ;;  %vm444_vm10 = vcmask (!%p188_p2), 916480   ;;  %vm291_vm11 = vcmask (!%p188_p2), 138240   ;;  %vm497_vm12 = vcmask (!%p188_p2), 1043456  }
   0x9   : > { %v227_v3 = vadd.s32 (!%p188_p2), 128, %v226_v2  ;;  %v232_v4 = vand.u32 (!%p188_p2), 15, %v226_v2  ;;  %s1104_s30 = smov (!%p188_p2), 16   ;;  %s1105_s6 = smov (!%p188_p2), 112   ;;  %vm493_vm13 = vcmask (!%p188_p2), 293888   ;;  %vm820_vm14 = vcmask (!%p188_p2), 588800  }
   0xb   : > { %v239_v5 = vand.u32 (!%p188_p2), 15, %v227_v3  ;;  %vm252_vm0 = vcmp.ge.s32.totalorder (!%p188_p2), %v232_v4, 1  ;;  %vm258_vm1 = vcmp.le.s32.totalorder (!%p188_p2), %v232_v4, 14 }
   0xc   : > { %v1152_v6 = vsel (!%p188_p2), %vm252_vm0, 1.0, %v1097_v1  ;;  %v1162_v8 = vsel (!%p188_p2), %vm258_vm1, 1.0, %v1097_v1 }
   0xd   : > { %s1338_s19 = smov (!%p215_p3, %s954_s19), 1  ;;  %vm253_vm2 = vcmp.ge.s32.totalorder %v239_v5, 1  ;;  %vm259_vm3 = vcmp.le.s32.totalorder %v239_v5, 14  ;;  %v1086_v16 = vld [vmem:[#allocation2 + $0xc] ss:$0 sps:$4 sm:$0xff]  }
   0xe   : > { %s973_s20 = sshll.u32 %s1338_s19, 3  ;;  %v1159_v7 = vsel %vm253_vm2, 1.0, %v1097_v1  ;;  %v1165_v9 = vsel %vm259_vm3, 1.0, %v1097_v1  ;;  %v408_v31 = vld [vmem:[#allocation2 + $0xc] sm:$0xf]  ;;  %s974_s15 = sshll.u32 %s1338_s19, 4 }
   0xf   : > { %s219_s23 = scalar_lea.vmem %s1331_s0, %s973_s20  ;;  %v272_v11 = vcombine.low %v1152_v6, %v1159_v7  ;;  %v321_v12 = vcombine.low %v1162_v8, %v1165_v9  ;;  %v382_v43 = vld [vmem:[#allocation2 + $0xc] sm:$0xf]  ;;  %s224_s20 = scalar_lea.vmem %s1336_s5, %s974_s15 }
  0x10   : > { %v1167_v10 = vld [vmem:[%s219_s23] sm:$0xff] }
  0x11   : > { %267 = vst [vmem:[#allocation2 + $0x4] sm:$0xff] %v1167_v10  ;;  %379 = vst [vmem:[#allocation3 + $0x20] sm:$0xf] %v1167_v10  ;;  %349 = vrot.lane.b32.xlu1 %v272_v11, %s1098_s24  ;;  %273 = vrot.lane.b32.xlu0 %v272_v11, %s1099_s25  ;;  %v377_v37 = vcombine.high %v1167_v10, %v1167_v10  ;;  %v436_v5 = vcombine.low %v1167_v10, %v1167_v10 }
  0x13   : > { %380 = vst [vmem:[#allocation3 + $0x28] sm:$0xf] %v377_v37 }
  0x15   : > { %322 = vrot.lane.b32.xlu0 %v321_v12, %s1100_s26  ;;  %409 = vrot.lane.b32.xlu1 %v272_v11, %s1101_s27  ;;  %v452_v11 = vld [vmem:[#allocation2 + $0xc] sm:$0xf] }
  0x18   : > { %v1084_v13 = vld [vmem:[#allocation2 + $0x8] ss:$0 sps:$4 sm:$0xff]   ;;  %v298_v14 = vld [vmem:[#allocation2] sm:$0xff] }
  0x19   : > { %383 = vrot.lane.b32.xlu0 %v321_v12, %s1102_s28  ;;  %453 = vrot.lane.b32.xlu1 %v321_v12, %s1103_s29  ;;  %v302_v15 = vcombine.low %v298_v14, %v298_v14  ;;  %v269_v19 = vld [vmem:[#allocation2 + $0x8] sm:$0xf] }
  0x1a   : > { %v318_v26 = vld [vmem:[#allocation2 + $0x8] sm:$0xf] }
  0x1b   : > { %v348_v33 = vld [vmem:[#allocation2 + $0x8] sm:$0xf] }
  0x1d   : > { %308 = vrot.lane.b32.xlu1 %v1084_v13, %s1104_s30  ;;  %306 = vrot.lane.b32.xlu0 %v298_v14, %s1104_s30  ;;  %v1018_v13 = vpack.i.bf16 %v1159_v7, %v1152_v6 }
  0x21   : > { %304 = vrot.lane.b32.xlu1 %v302_v15, %s1104_s30  ;;  %440 = vrot.lane.b32.xlu0 %v1167_v10, %s1105_s6  ;;  %v1023_v15 = vpack.i.bf16 %v1165_v9, %v1162_v8 }
  0x25   : > { %442 = vrot.lane.b32.xlu1 %v1086_v16, %s1105_s6 }
  0x83   : > { %v350_v17 = vpop.permute.xlu1 %349  ;;  %v274_v18 = vpop.permute.xlu0 %273 }
  0x84   : > { %v351_v20 = vrot.slane %v350_v17, 4  ;;  %v275_v21 = vrot.slane %v274_v18, 4 }
  0x86   : > { %v353_v22 = vsel %vm352_vm4, %v351_v20, %v350_v17  ;;  %v281_v23 = vmul.f32 %v275_v21, %v269_v19  ;;  %v277_v28 = vsel %vm276_vm5, %v275_v21, %v274_v18  ;;  %v357_v41 = vmul.f32 %v351_v20, %v348_v33 }
  0x87   : > { %v356_v24 = vmul.f32 %v353_v22, %v298_v14  ;;  %v323_v25 = vpop.permute.xlu0 %322  ;;  %v410_v27 = vpop.permute.xlu1 %409  ;;  %v280_v34 = vmul.f32 %v298_v14, %v277_v28 }
  0x88   : > { %v324_v29 = vrot.slane %v323_v25, 4  ;;  %289 = vrot.lane.b32.xlu1 %v281_v23, %s1103_s29  ;;  %v411_v30 = vrot.slane %v410_v27, 4  ;;  %v361_v49 = vcombine.low %v357_v41, %v357_v41 }
  0x89   : > { %364 = vrot.lane.b32.xlu0 %v356_v24, %s1102_s28  ;;  %v284_v56 = vcombine.high %v280_v34, %v280_v34  ;;  %v360_v61 = vcombine.low %v356_v24, %v356_v24 }
  0x8a   : > { %v330_v32 = vmul.f32 %v324_v29, %v318_v26  ;;  %v326_v38 = vsel %vm325_vm6, %v324_v29, %v323_v25  ;;  %v416_v39 = vmul.f32 %v411_v30, %v408_v31  ;;  %v412_v58 = vsel %vm340_vm9, %v411_v30, %v410_v27 }
  0x8b   : > { %v384_v35 = vpop.permute.xlu0 %383  ;;  %v454_v36 = vpop.permute.xlu1 %453  ;;  %v329_v42 = vmul.f32 %v326_v38, %v298_v14  ;;  %v415_v62 = vmul.f32 %v412_v58, %v1167_v10  ;;  %v1106_v14 = vmov 0  }
  0x8c   : > { %338 = vrot.lane.b32.xlu1 %v330_v32, %s1101_s27  ;;  %v385_v40 = vrot.slane %v384_v35, 4  ;;  %v455_v53 = vrot.slane %v454_v36, 4  ;;  %1017 = vset.pattern.permute.xlu0 %v1106_v14 }
  0x8d   : > { %285 = vrot.lane.b32.xlu0 %v280_v34, %s1103_s29  ;;  %v333_v63 = vcombine.high %v329_v42, %v329_v42  ;;  %v419_v2 = vcombine.high %v415_v62, %v415_v62  ;;  %1083 = vset.pattern.permute.xlu1 %v1106_v14 }
  0x8e   : > { %v386_v46 = vsel %vm368_vm7, %v385_v40, %v384_v35  ;;  %v390_v48 = vmul.f32 %v385_v40, %v382_v43  ;;  %v456_v60 = vsel %vm291_vm11, %v455_v53, %v454_v36  ;;  %v460_v12 = vmul.f32 %v455_v53, %v452_v11 }
  0x8f   : > { %v309_v44 = vpop.permute.xlu1 %308  ;;  %v307_v45 = vpop.permute.xlu0 %306  ;;  %v389_v50 = vmul.f32 %v386_v46, %v1167_v10  ;;  %v459_v0 = vmul.f32 %v456_v60, %v1167_v10  ;;  %v487_v10 = vld [vmem:[%s1333_s2] sm:$0xff] }
  0x90   : > { %424 = vrot.lane.b32.xlu1 %v416_v39, %s1100_s26  ;;  %v312_v47 = vsel %vm310_vm8, %v307_v45, %v309_v44  ;;  %v394_v55 = vcombine.low %v390_v48, %v390_v48 }
  0x91   : > { %334 = vrot.lane.b32.xlu0 %v329_v42, %s1101_s27  ;;  %316 = vst [vmem:[#allocation3 + $0x8] sm:$0xf0] %v312_v47  ;;  %v463_v3 = vcombine.high %v459_v0, %v459_v0  ;;  %v393_v4 = vcombine.low %v389_v50, %v389_v50 }
  0x93   : > { %v305_v51 = vpop.permute.xlu1 %304  ;;  %v1204_v54 = vpop.permute.xlu0 %440 }
  0x94   : > { %366 = vrot.lane.b32.xlu1 %v361_v49, %s1102_s28  ;;  %v311_v52 = vsel %vm310_vm8, %v305_v51, %v307_v45 }
  0x95   : > { %397 = vrot.lane.b32.xlu0 %v389_v50, %s1098_s24  ;;  %315 = vst [vmem:[#allocation3] sm:$0xf0] %v311_v52 }
  0x97   : > { %v443_v57 = vpop.permute.xlu1 %442 }
  0x98   : > { %399 = vrot.lane.b32.xlu1 %v394_v55, %s1098_s24  ;;  %v446_v59 = vsel %vm444_vm10, %v1204_v54, %v443_v57 }
  0x99   : > { %287 = vrot.lane.b32.xlu0 %v284_v56, %s1103_s29  ;;  %450 = vst [vmem:[#allocation3 + $0x38] sm:$0xf0] %v446_v59 }
  0x9c   : > { %362 = vrot.lane.b32.xlu1 %v360_v61, %s1102_s28 }
  0x9d   : > { %336 = vrot.lane.b32.xlu0 %v333_v63, %s1101_s27 }
  0xa0   : > { %420 = vrot.lane.b32.xlu1 %v415_v62, %s1100_s26 }
  0xa1   : > { %422 = vrot.lane.b32.xlu0 %v419_v2, %s1100_s26 }
  0xa4   : > { %466 = vrot.lane.b32.xlu1 %v463_v3, %s1099_s25 }
  0xa5   : > { %395 = vrot.lane.b32.xlu0 %v393_v4, %s1098_s24  ;;  %v476_v4 = vld [vmem:[%s1332_s1] sm:$0xff] }
  0xa8   : > { %464 = vrot.lane.b32.xlu1 %v459_v0, %s1099_s25 }
  0xa9   : > { %438 = vrot.lane.b32.xlu0 %v436_v5, %s1105_s6 }
  0xac   : > { %1019 = vrot.lane.b32.xlu1 %v1018_v13, %s1099_s25 }
  0xad   : > { %468 = vrot.lane.b32.xlu0 %v460_v12, %s1099_s25 }
  0xb0   : > { %1024 = vrot.lane.b32.xlu1 %v1023_v15, %s1100_s26 }
  0xb1   : > { %490 = vperm.xlu0 %1017, %v487_v10  }
  0xb4   : > { %1034 = vrot.lane.b32.xlu1 %v1023_v15, %s1102_s28 }
  0xb5   : > { %1029 = vrot.lane.b32.xlu0 %v1018_v13, %s1098_s24 }
  0xb8   : > { %1044 = vrot.lane.b32.xlu1 %v1023_v15, %s1103_s29 }
  0xb9   : > { %1039 = vrot.lane.b32.xlu0 %v1018_v13, %s1101_s27 }
  0xbc   : > { %616 = vrot.lane.b32.xlu1 %v1097_v1, %s1104_s30 }
  0xfa   : > { %v290_v6 = vpop.permute.xlu1 %289 }
  0xfb   : > { %v365_v7 = vpop.permute.xlu0 %364 }
  0xfe   : > { %v339_v16 = vpop.permute.xlu1 %338 }
  0xff   : > { %v286_v17 = vpop.permute.xlu0 %285 }
 0x102   : > { %v425_v18 = vpop.permute.xlu1 %424 }
 0x103   : > { %v335_v8 = vpop.permute.xlu0 %334 }
 0x106   : > { %v367_v9 = vpop.permute.xlu1 %366 }
 0x107   : > { %v370_v19 = vsel %vm368_vm7, %v365_v7, %v367_v9  ;;  %v398_v20 = vpop.permute.xlu0 %397 }
 0x108   : > { %374 = vst [vmem:[#allocation3 + $0x18] sm:$0xf0] %v370_v19 }
 0x10a   : > { %v400_v21 = vpop.permute.xlu1 %399 }
 0x10b   : > { %v402_v22 = vsel %vm352_vm4, %v398_v20, %v400_v21  ;;  %v288_v23 = vpop.permute.xlu0 %287 }
 0x10c   : > { %406 = vst [vmem:[#allocation3 + $0x28] sm:$0xf0] %v402_v22  ;;  %v292_v24 = vsel %vm291_vm11, %v286_v17, %v288_v23  ;;  %v293_v25 = vsel %vm291_vm11, %v288_v23, %v290_v6 }
 0x10d   : > { %296 = vst [vmem:[#allocation3] sm:$0xf] %v292_v24  ;;  %297 = vst [vmem:[#allocation3 + $0x8] sm:$0xf] %v293_v25 }
 0x10e   : > { %v363_v26 = vpop.permute.xlu1 %362 }
 0x10f   : > { %v369_v27 = vsel %vm368_vm7, %v363_v26, %v365_v7  ;;  %v337_v28 = vpop.permute.xlu0 %336 }
 0x110   : > { %373 = vst [vmem:[#allocation3 + $0x10] sm:$0xf0] %v369_v27  ;;  %v341_v29 = vsel %vm340_vm9, %v335_v8, %v337_v28  ;;  %v342_v30 = vsel %vm340_vm9, %v337_v28, %v339_v16 }
 0x111   : > { %345 = vst [vmem:[#allocation3 + $0x10] sm:$0xf] %v341_v29  ;;  %346 = vst [vmem:[#allocation3 + $0x18] sm:$0xf] %v342_v30 }
 0x112   : > { %v421_v31 = vpop.permute.xlu1 %420 }
 0x113   : > { %v423_v32 = vpop.permute.xlu0 %422  ;;  %v482_v48 = vld [vmem:[#allocation3 + $0x28] sm:$0xff] }
 0x114   : > { %v426_v33 = vsel %vm325_vm6, %v421_v31, %v423_v32  ;;  %v427_v34 = vsel %vm325_vm6, %v423_v32, %v425_v18  ;;  %v478_v37 = vld [vmem:[#allocation3 + $0x8] sm:$0xff]  ;;  %v477_v40 = vld [vmem:[#allocation3] sm:$0xff] }
 0x115   : > { %430 = vst [vmem:[#allocation3 + $0x30] sm:$0xf] %v426_v33  ;;  %431 = vst [vmem:[#allocation3 + $0x38] sm:$0xf] %v427_v34 }
 0x116   : > { %v467_v35 = vpop.permute.xlu1 %466 }
 0x117   : > { %v396_v36 = vpop.permute.xlu0 %395 }
 0x118   : > { %v401_v38 = vsel %vm352_vm4, %v396_v36, %v398_v20  ;;  %v480_v39 = vld [vmem:[#allocation3 + $0x18] sm:$0xff]  ;;  %v479_v41 = vld [vmem:[#allocation3 + $0x10] sm:$0xff] }
 0x119   : > { %405 = vst [vmem:[#allocation3 + $0x20] sm:$0xf0] %v401_v38  ;;  %v975_v42 = vpack.c.bf16 %v480_v39, %v478_v37  ;;  %v977_v43 = vpack.c.bf16 %v479_v41, %v477_v40 }
 0x11a   : > { %v465_v44 = vpop.permute.xlu1 %464 }
 0x11b   : > { %v470_v45 = vsel %vm276_vm5, %v465_v44, %v467_v35  ;;  %976 = vmatprep.subr.bf16.mxu0 %v975_v42  ;;  %v439_v46 = vpop.permute.xlu0 %438 }
 0x11c   : > { %474 = vst [vmem:[#allocation3 + $0x40] sm:$0xf] %v470_v45  ;;  %v445_v47 = vsel %vm444_vm10, %v439_v46, %v1204_v54  ;;  %978 = vmatpush1.bf16.msra.mxu0 %v977_v43  ;;  %v484_v49 = vld [vmem:[#allocation3 + $0x38] sm:$0xff] }
 0x11d   : > { %449 = vst [vmem:[#allocation3 + $0x30] sm:$0xf0] %v445_v47  ;;  %v979_v50 = vpack.c.bf16 %v484_v49, %v482_v48 }
 0x11e   : > { %v1020_v53 = vpop.permute.xlu1 %1019 }
 0x11f   : > { %980 = vmatprep.subr.bf16.mxu0 %v979_v50  ;;  %v469_v51 = vpop.permute.xlu0 %468  ;;  %v1022_v55 = vunpack.i.h.bf16 %v1020_v53  ;;  %v1021_v56 = vunpack.i.l.bf16 %v1020_v53  ;;  %v814_v50 = vld [vmem:[%s1335_s4] sm:$0xff] }
 0x120   : > { %v471_v52 = vsel %vm276_vm5, %v467_v35, %v469_v51  ;;  %v481_v59 = vld [vmem:[#allocation3 + $0x20] sm:$0xff] }
 0x121   : > { %475 = vst [vmem:[#allocation3 + $0x48] sm:$0xf] %v471_v52  ;;  %v588_v57 = vsel %vm276_vm5, %v1021_v56, %v1022_v55  ;;  %v592_v58 = vmul.f32 0.0, %v1021_v56 }
 0x122   : > { %v1025_v61 = vpop.permute.xlu1 %1024 }
 0x123   : > { %v1027_v62 = vunpack.i.h.bf16 %v1025_v61  ;;  %v1026_v63 = vunpack.i.l.bf16 %v1025_v61  ;;  %598 = vrot.lane.b32.xlu0 %v592_v58, %s1103_s29  ;;  %v485_v5 = vld [vmem:[#allocation3 + $0x40] sm:$0xf] }
 0x124   : > { %v483_v60 = vld [vmem:[#allocation3 + $0x30] sm:$0xff] }
 0x125   : > { %v981_v54 = vpack.c.bf16 %v483_v60, %v481_v59  ;;  %v635_v0 = vsel %vm325_vm6, %v1026_v63, %v1027_v62  ;;  %v639_v2 = vmul.f32 0.0, %v1026_v63 }
 0x126   : > { %v1035_v25 = vpop.permute.xlu1 %1034 }
 0x127   : > { %982 = vmatpush1.bf16.msra.mxu0 %v981_v54  ;;  %645 = vrot.lane.b32.xlu0 %v639_v2, %s1101_s27  ;;  %v1037_v27 = vunpack.i.h.bf16 %v1035_v25  ;;  %v1036_v28 = vunpack.i.l.bf16 %v1035_v25 }
 0x128   : > { %v486_v3 = vld [vmem:[#allocation3 + $0x48] sm:$0xf] }
 0x129   : > { %967 = vmatprep.subr.msk.mxu0 %vm497_vm12, %v486_v3  ;;  %v697_v33 = vsel %vm368_vm7, %v1036_v28, %v1037_v27  ;;  %v703_v36 = vmul.f32 0.0, %v1037_v27 }
 0x12a   : > { %v1045_v40 = vpop.permute.xlu1 %1044 }
 0x12b   : > { %968 = vmatpush1.msk.msra.mxu0 %vm497_vm12, %v485_v5  ;;  %v1047_v45 = vunpack.i.h.bf16 %v1045_v40  ;;  %v1046_v46 = vunpack.i.l.bf16 %v1045_v40 }
 0x12c   : > { %969 = vmatmul.mubr.msk.f32.vlgmr.msra.gmra.mrb[0].mxu0 %vm493_vm13, %v476_v4 }
 0x12d   : > { %v779_v47 = vmul.f32 0.0, %v1047_v45  ;;  %v773_v49 = vsel %vm291_vm11, %v1046_v46, %v1047_v45 }
 0x12e   : > { %v617_v52 = vpop.permute.xlu1 %616 }
 0x130   : > { %v491_v11 = vpop.permute.xlu0 %490 }
 0x134   : > { %v1030_v12 = vpop.permute.xlu0 %1029 }
 0x135   : > { %v1031_v13 = vunpack.i.l.bf16 %v1030_v12  ;;  %v1032_v10 = vunpack.i.h.bf16 %v1030_v12 }
 0x137   : > { %v668_v14 = vmul.f32 0.0, %v1031_v13  ;;  %v664_v16 = vsel %vm352_vm4, %v1031_v13, %v1032_v10 }
 0x138   : > { %v1040_v29 = vpop.permute.xlu0 %1039 }
 0x139   : > { %674 = vrot.lane.b32.xlu1 %v668_v14, %s1102_s28  ;;  %v1041_v32 = vunpack.i.l.bf16 %v1040_v29  ;;  %v1042_v34 = vunpack.i.h.bf16 %v1040_v29 }
 0x13b   : > { %v726_v39 = vsel %vm340_vm9, %v1041_v32, %v1042_v34  ;;  %v732_v42 = vmul.f32 0.0, %v1042_v34 }
 0x195   : > { %v599_v53 = vpop.permute.xlu0 %598 }
 0x199   : > { %v646_v56 = vpop.permute.xlu0 %645 }
 0x1ff   : > { %v570_v15 = vpop.f32.mrb[0].mxu0 }
 0x200   : > { %v571_v6 = vadd.f32 %v570_v15, %v491_v11  ;;  %v572_v7 = vpop.f32.mrb[1].mxu0 }
 0x201   : > { %v573_v17 = vadd.f32 %v572_v7, %v491_v11 }
 0x202   : > { %v1263_v18 = vmax.f32 %v571_v6, 0.0 }
 0x203   : > { %v1265_v8 = vmax.f32 %v573_v17, 0.0 }
 0x204   : > { %v593_v9 = vmul.f32 %v588_v57, %v1263_v18  ;;  %v669_v19 = vmul.f32 %v664_v16, %v1263_v18  ;;  %v640_v23 = vmul.f32 %v635_v0, %v1263_v18  ;;  %v701_v35 = vmul.f32 %v1036_v28, %v1263_v18 }
 0x205   : > { %v1048_v20 = vpack.i.bf16 %v1265_v8, %v1263_v18  ;;  %v594_v21 = vmul.f32 %v1022_v55, %v1265_v8  ;;  %v670_v22 = vmul.f32 %v1032_v10, %v1265_v8  ;;  %v641_v24 = vmul.f32 %v1027_v62, %v1265_v8  ;;  %v675_v55 = vpop.permute.xlu1 %674 }
 0x206   : > { %v730_v37 = vmul.f32 %v1041_v32, %v1263_v18  ;;  %v702_v38 = vmul.f32 %v697_v33, %v1265_v8  ;;  %v1068_v41 = vpack.i.bf16 %v1097_v1, %v1265_v8  ;;  %v731_v44 = vmul.f32 %v726_v39, %v1265_v8 }
 0x207   : > { %1049 = vrot.lane.b32.xlu1 %v1048_v20, %s1104_s30  ;;  %v1053_v26 = vpack.i.bf16 %v594_v21, %v593_v9  ;;  %v1058_v30 = vpack.i.bf16 %v641_v24, %v640_v23  ;;  %v1063_v31 = vpack.i.bf16 %v670_v22, %v669_v19  ;;  %v778_v1 = vmul.f32 %v773_v49, %v1265_v8 }
 0x208   : > { %v1073_v43 = vpack.i.bf16 %v703_v36, %v702_v38  ;;  %v1078_v48 = vpack.i.bf16 %v732_v42, %v731_v44  ;;  %v777_v51 = vmul.f32 %v1046_v46, %v1263_v18  ;;  %v795_v44 = vld [vmem:[%s1334_s3] sm:$0xff] }
 0x209   : > { %1054 = vrot.lane.b32.xlu0 %v1053_v26, %s1103_s29 }
 0x20b   : > { %1064 = vrot.lane.b32.xlu1 %v1063_v31, %s1102_s28 }
 0x20d   : > { %1059 = vrot.lane.b32.xlu0 %v1058_v30, %s1101_s27 }
 0x20f   : > { %707 = vrot.lane.b32.xlu1 %v701_v35, %s1098_s24 }
 0x211   : > { %736 = vrot.lane.b32.xlu0 %v730_v37, %s1100_s26 }
 0x213   : > { %1069 = vrot.lane.b32.xlu1 %v1068_v41, %s1105_s6 }
 0x215   : > { %1074 = vrot.lane.b32.xlu0 %v1073_v43, %s1098_s24 }
 0x217   : > { %754 = vrot.lane.b32.xlu1 %v1263_v18, %s1105_s6 }
 0x219   : > { %1079 = vrot.lane.b32.xlu0 %v1078_v48, %s1100_s26 }
 0x21b   : > { %787 = vrot.lane.b32.xlu1 %v779_v47, %s1099_s25 }
 0x21d   : > { %785 = vrot.lane.b32.xlu0 %v778_v1, %s1099_s25 }
 0x21f   : > { %817 = vperm.xlu1 %1083, %v814_v50  }
 0x221   : > { %783 = vrot.lane.b32.xlu0 %v777_v51, %s1099_s25 }
 0x279   : > { %v1050_v57 = vpop.permute.xlu1 %1049 }
 0x27a   : > { %v1052_v58 = vunpack.i.h.bf16 %v1050_v57  ;;  %v1051_v59 = vunpack.i.l.bf16 %v1050_v57 }
 0x27b   : > { %v1055_v60 = vpop.permute.xlu0 %1054 }
 0x27c   : > { %v1057_v61 = vunpack.i.h.bf16 %v1055_v60  ;;  %v1056_v54 = vunpack.i.l.bf16 %v1055_v60  ;;  %v623_v63 = vsel %vm310_vm8, %v1051_v59, %v1052_v58  ;;  %v622_v0 = vsel %vm310_vm8, %v617_v52, %v1051_v59 }
 0x27d   : > { %v1065_v62 = vpop.permute.xlu1 %1064 }
 0x27e   : > { %v1067_v2 = vunpack.i.h.bf16 %v1065_v62  ;;  %v1066_v3 = vunpack.i.l.bf16 %v1065_v62  ;;  %v605_v4 = vsel %vm291_vm11, %v1056_v54, %v1057_v61  ;;  %v604_v5 = vsel %vm291_vm11, %v599_v53, %v1056_v54 }
 0x27f   : > { %v1060_v11 = vpop.permute.xlu0 %1059  ;;  %v983_v12 = vpack.c.bf16 %v623_v63, %v605_v4  ;;  %v985_v13 = vpack.c.bf16 %v622_v0, %v604_v5 }
 0x280   : > { %v1062_v14 = vunpack.i.h.bf16 %v1060_v11  ;;  %v1061_v10 = vunpack.i.l.bf16 %v1060_v11  ;;  %v681_v7 = vsel %vm368_vm7, %v1066_v3, %v1067_v2  ;;  %v680_v17 = vsel %vm368_vm7, %v675_v55, %v1066_v3 }
 0x281   : > { %984 = vmatprep.subr.bf16.mxu1 %v983_v12  ;;  %v708_v15 = vpop.permute.xlu1 %707 }
 0x282   : > { %986 = vmatpush1.bf16.msra.mxu1 %v985_v13  ;;  %v652_v6 = vsel %vm340_vm9, %v1061_v10, %v1062_v14  ;;  %v651_v16 = vsel %vm340_vm9, %v646_v56, %v1061_v10 }
 0x283   : > { %v737_v9 = vpop.permute.xlu0 %736  ;;  %v987_v19 = vpack.c.bf16 %v681_v7, %v652_v6  ;;  %v989_v20 = vpack.c.bf16 %v680_v17, %v651_v16 }
 0x285   : > { %v1070_v21 = vpop.permute.xlu1 %1069  ;;  %988 = vmatprep.subr.bf16.mxu1 %v987_v19 }
 0x286   : > { %990 = vmatpush1.bf16.msra.mxu1 %v989_v20  ;;  %v1072_v25 = vunpack.i.h.bf16 %v1070_v21  ;;  %v1071_v26 = vunpack.i.l.bf16 %v1070_v21 }
 0x287   : > { %v1075_v22 = vpop.permute.xlu0 %1074 }
 0x288   : > { %v1077_v23 = vunpack.i.h.bf16 %v1075_v22  ;;  %v1076_v24 = vunpack.i.l.bf16 %v1075_v22  ;;  %v761_v37 = vsel %vm444_vm10, %v1071_v26, %v1072_v25 }
 0x289   : > { %v755_v29 = vpop.permute.xlu1 %754 }
 0x28a   : > { %v714_v27 = vsel %vm352_vm4, %v1076_v24, %v1077_v23  ;;  %v713_v28 = vsel %vm352_vm4, %v708_v15, %v1076_v24  ;;  %v760_v35 = vsel %vm444_vm10, %v755_v29, %v1071_v26 }
 0x28b   : > { %v1080_v30 = vpop.permute.xlu0 %1079  ;;  %v991_v31 = vpack.c.bf16 %v714_v27, %v1265_v8  ;;  %v993_v32 = vpack.c.bf16 %v713_v28, %v1263_v18 }
 0x28c   : > { %v1082_v33 = vunpack.i.h.bf16 %v1080_v30  ;;  %v1081_v34 = vunpack.i.l.bf16 %v1080_v30 }
 0x28d   : > { %992 = vmatprep.subr.bf16.mxu1 %v991_v31  ;;  %v788_v40 = vpop.permute.xlu1 %787 }
 0x28e   : > { %994 = vmatpush1.bf16.msra.mxu1 %v993_v32  ;;  %v743_v36 = vsel %vm325_vm6, %v1081_v34, %v1082_v33  ;;  %v742_v38 = vsel %vm325_vm6, %v737_v9, %v1081_v34 }
 0x28f   : > { %v786_v39 = vpop.permute.xlu0 %785  ;;  %v995_v41 = vpack.c.bf16 %v761_v37, %v743_v36  ;;  %v997_v42 = vpack.c.bf16 %v760_v35, %v742_v38 }
 0x290   : > { %v790_v18 = vsel %vm276_vm5, %v786_v39, %v788_v40 }
 0x291   : > { %996 = vmatprep.subr.bf16.mxu1 %v995_v41 }
 0x292   : > { %998 = vmatpush1.bf16.msra.mxu1 %v997_v42 }
 0x293   : > { %v784_v8 = vpop.permute.xlu0 %783  ;;  %840 = vmatprep.subr.mxu1 %v790_v18 }
 0x294   : > { %v789_v43 = vsel %vm276_vm5, %v784_v8, %v786_v39 }
 0x296   : > { %841 = vmatpush1.msra.mxu1 %v789_v43 }
 0x297   : > { %970 = vmatmul.mubr.msk.f32.vlgmr.msra.gmra.mrb[0].mxu1 %vm820_vm14, %v795_v44 }
 0x29e   : > { %v818_v45 = vpop.permute.xlu1 %817 }
 0x36a   : > { %v890_v46 = vpop.f32.mrb[0].mxu1 }
 0x36b   : > { %v891_v47 = vadd.f32 %v890_v46, %v818_v45  ;;  %v892_v48 = vpop.f32.mrb[1].mxu1 }
 0x36c   : > { %v893_v49 = vadd.f32 %v892_v48, %v818_v45 }
 0x36d   : > { %v895_v1 = vmax.f32 %v891_v47, 0.0 }
 0x36e   : > { %v896_v50 = vmax.f32 %v893_v49, 0.0 }
 0x36f   : > { %897 = vst [vmem:[%s224_s20] sm:$0xff] %v895_v1 }
 0x370   : > { %898 = vst [vmem:[%s224_s20 + $0x8] sm:$0xff] %v896_v50 }
 0x371 PF: > { %s15_s18 = sadd.s32 1, %s1095_s18  }
 0x372   : > { %p12_p4 = scmp.ge.s32.totalorder %s15_s18, 4  }
 0x374   :  { %14 = sbr.rel (!%p12_p4) target bundleno = 1 (0x1), region = 70 }

</bundles_post_ra>
